<compile_context>
chip_gen: v7x
topology: tpu7x:2x2x1
jax: 0.10.0
libtpu: 0.0.40
codegen_flags: <defaults>
</compile_context>

<pallas_src>
import functools
import numpy as np
import jax
import jax.numpy as jnp
from jax.experimental import pallas as pl
from jax.experimental.pallas import tpu as pltpu


def _round_up(x, m):
    return ((x + m - 1) // m) * m


# ----------------------------------------------------------------------------
# Filter construction glue (numpy, deterministic) -- mirrors the torch module.
# ----------------------------------------------------------------------------
def gaussian1d_np(window_size, sigma):
    x = np.arange(window_size, dtype=np.float64)
    g = np.exp(-(x - window_size // 2) ** 2 / (2.0 * sigma ** 2))
    return g / g.sum()


def edge_conv2d_np(im):
    # 3x3 Sobel, zero padding=1 (matches edge_conv2d with in_ch=out_ch=1)
    k = np.array([[-1, 0, 1], [-2, 0, 2], [-1, 0, 1]], dtype=np.float64)
    H, W = im.shape
    p = np.pad(im, 1)
    out = np.zeros_like(im)
    for di in range(3):
        for dj in range(3):
            out += k[di, dj] * p[di:di + H, dj:dj + W]
    return out


def gmf_np(kernel_size, sigma, order=0):
    wsize_x, wsize_y = kernel_size
    row = gaussian1d_np(wsize_x, sigma).reshape(1, -1)
    f = np.repeat(row, wsize_y, axis=0)          # (wsize_y, wsize_x)
    for _ in range(order):
        f = edge_conv2d_np(f)
    return f


def bilinear_sample_np(img, xs, ys):
    # bilinear sampling with zero padding outside the image
    H, W = img.shape
    x0 = np.floor(xs).astype(np.int64); x1 = x0 + 1
    y0 = np.floor(ys).astype(np.int64); y1 = y0 + 1
    wx1 = xs - x0; wx0 = 1.0 - wx1
    wy1 = ys - y0; wy0 = 1.0 - wy1

    def get(yy, xx):
        valid = (yy >= 0) & (yy < H) & (xx >= 0) & (xx < W)
        yy_c = np.clip(yy, 0, H - 1)
        xx_c = np.clip(xx, 0, W - 1)
        return np.where(valid, img[yy_c, xx_c], 0.0)

    return (wy0 * wx0 * get(y0, x0) + wy0 * wx1 * get(y0, x1)
            + wy1 * wx0 * get(y1, x0) + wy1 * wx1 * get(y1, x1))


def remap_np(bank, map_x, map_y):
    # bank: (1, C, kh, kw); map_x/map_y: (kh, kw) pixel coordinates.
    # kornia.remap normalizes with (size-1) then samples align_corners=False:
    #   src = map * size/(size-1) - 0.5
    _, C, H, W = bank.shape
    xs = map_x * (W / (W - 1.0)) - 0.5
    ys = map_y * (H / (H - 1.0)) - 0.5
    out = np.zeros_like(bank)
    for c in range(C):
        out[0, c] = bilinear_sample_np(bank[0, c], xs, ys)
    return out


def rotate_bank_np(bank, angle_deg):
    # bank: (NF, C, kh, kw), rotate each plane about its center (bilinear, zeros)
    NF, C, H, W = bank.shape
    a = np.deg2rad(angle_deg)
    cy, cx = (H - 1) / 2.0, (W - 1) / 2.0
    yy, xx = np.meshgrid(np.arange(H, dtype=np.float64),
                         np.arange(W, dtype=np.float64), indexing='ij')
    cos_a, sin_a = np.cos(a), np.sin(a)
    xs = cos_a * (xx - cx) + sin_a * (yy - cy) + cx
    ys = -sin_a * (xx - cx) + cos_a * (yy - cy) + cy
    out = np.zeros_like(bank)
    for n in range(NF):
        for c in range(C):
            out[n, c] = bilinear_sample_np(bank[n, c], xs, ys)
    return out


def gaussian_smooth_np(img, sigma):
    # separable gaussian filter, 'constant' (zero) boundary, truncate=4
    radius = int(4.0 * sigma + 0.5)
    x = np.arange(-radius, radius + 1, dtype=np.float64)
    g = np.exp(-x ** 2 / (2.0 * sigma ** 2))
    g /= g.sum()
    H, W = img.shape
    p = np.pad(img, ((0, 0), (radius, radius)))
    tmp = np.zeros_like(img)
    for j in range(W):
        tmp[:, j] = (p[:, j:j + 2 * radius + 1] * g).sum(axis=1)
    p2 = np.pad(tmp, ((radius, radius), (0, 0)))
    out = np.zeros_like(img)
    for i in range(H):
        out[i, :] = (p2[i:i + 2 * radius + 1, :] * g[:, None]).sum(axis=0)
    return out


# ----------------------------------------------------------------------------
# Pallas kernel: one fused matmul over (orientations x filters) folded into the
# lane axis, then per-filter lane-group max.  Grid = row tiles (parallel).
# ----------------------------------------------------------------------------
def _dgmf_kernel(p_ref, w_ref, o_ref, *, n_filters, t_lane):
    # p_ref: (TILE_N, K_pad) bf16   w_ref: (K_pad, n_filters * t_lane) bf16
    # o_ref: (TILE_N, n_filters) f32
    r = jnp.dot(p_ref[...], w_ref[...], preferred_element_type=jnp.float32)
    outs = []
    for f in range(n_filters):
        # 128-aligned lane group: responses of filter f for all orientations
        # (orientations replicated beyond T, so the group max == max over T).
        grp = r[:, f * t_lane:(f + 1) * t_lane]
        outs.append(jnp.max(grp, axis=1, keepdims=True))
    o_ref[...] = jnp.concatenate(outs, axis=1)


def dgmf_conv_max(patches, weights, n_filters, t_lane, tile_n):
    # patches: (N_pad, K_pad) bf16, weights: (K_pad, n_filters*t_lane) bf16
    N_pad, K_pad = patches.shape
    _, FT = weights.shape
    assert N_pad % tile_n == 0 and FT == n_filters * t_lane
    kernel = functools.partial(_dgmf_kernel, n_filters=n_filters, t_lane=t_lane)
    return pl.pallas_call(
        kernel,
        out_shape=jax.ShapeDtypeStruct((N_pad, n_filters), jnp.float32),
        grid_spec=pltpu.PrefetchScalarGridSpec(
            num_scalar_prefetch=0,
            grid=(N_pad // tile_n,),
            in_specs=[
                pl.BlockSpec((tile_n, K_pad), lambda i: (i, 0)),
                # folded weights are tiny -> resident (constant index_map)
                pl.BlockSpec((K_pad, FT), lambda i: (0, 0)),
            ],
            out_specs=pl.BlockSpec((tile_n, n_filters), lambda i: (i, 0)),
        ),
        compiler_params=pltpu.CompilerParams(
            dimension_semantics=("parallel",)),
    )(patches, weights)


# ----------------------------------------------------------------------------
# Module-equivalent wrapper
# ----------------------------------------------------------------------------
class ApplyDGMFPallas:
    # default row tile: multiple of 8/16, large enough for ~85% HBM roofline,
    # small enough for v7x's 32 MiB scoped VMEM even at large K_pad.
    TILE_N = 1024

    def __init__(self, kernel_size, sigmas, alphas, n_orientations=24,
                 dx=None, dy=None, order=0, compute_dtype=jnp.bfloat16):
        self.kernel_size = kernel_size
        self.sigmas = np.asarray(sigmas, dtype=np.float64)
        self.alphas = np.asarray(alphas, dtype=np.float64)
        self.n_orientations = n_orientations
        self.order = order
        ph = (kernel_size[0] - 1) // 2
        pw = (kernel_size[1] - 1) // 2
        self._padding = (ph, pw)
        self.dx = dx
        self.dy = dy
        self.n_filters = len(self.sigmas)
        self.compute_dtype = compute_dtype
        self._weight_cache = {}   # keyed by channel count

    # ---- host-side bank construction (cached) -------------------------------
    def _build_rotated_banks(self, c):
        kh, kw = self.kernel_size
        if self.dx is None or self.dy is None:
            # deterministic smoothed deformation fields (mirrors
            # gaussian_filter(rand*2-1, 4.0) but seeded)
            rng = np.random.RandomState(0)
            self.dx = gaussian_smooth_np(rng.rand(kh, kw) * 2 - 1, 4.0)
            self.dy = gaussian_smooth_np(rng.rand(kh, kw) * 2 - 1, 4.0)

        # torch.meshgrid(arange(kw), arange(kh)) with 'ij' indexing;
        # square kernel assumed (as in the reference usage) -> (kh, kw)
        grid_x, grid_y = np.meshgrid(np.arange(kw, dtype=np.float64),
                                     np.arange(kh, dtype=np.float64),
                                     indexing='ij')

        banks = []
        for i, s in enumerate(self.sigmas):
            kernel2d = gmf_np(self.kernel_size, float(s), order=self.order)
            bank = np.broadcast_to(kernel2d, (1, c, kh, kw)).copy()  # repeat(1,c,1,1)
            map_x = grid_x + self.dx * 10.0 * self.alphas[i]
            map_y = grid_y + self.dy * 10.0 * self.alphas[i]
            bank = remap_np(bank, map_x, map_y)
            banks.append(bank)
        kernels = np.concatenate(banks, axis=0)      # (n_filters, c, kh, kw)

        rotated = []
        for theta in range(self.n_orientations):
            angle = theta * (360.0 / self.n_orientations)
            rk = rotate_bank_np(kernels, angle)
            rk = rk - rk.mean()                      # scalar mean of whole bank
            rotated.append(rk)
        return np.stack(rotated, axis=0)             # (T, n_filters, c, kh, kw)

    def _get_folded_weights(self, c):
        """Folded weight matrix (K_pad, n_filters * T_LANE) bf16 on device."""
        if c in self._weight_cache:
            return self._weight_cache[c]
        kh, kw = self.kernel_size
        rbanks = self._build_rotated_banks(c).astype(np.float32)  # (T,F,C,kh,kw)
        T, F = rbanks.shape[0], rbanks.shape[1]
        K = c * kh * kw
        K_pad = _round_up(K, 128)
        t_lane = _round_up(max(T, 1), 128)            # 128-lane group per filter

        w = rbanks.reshape(T, F, K).transpose(2, 1, 0)   # (K, F, T)
        # replicate real orientations to fill the 128-lane group: duplicates
        # are inert under max, so no in-kernel masking is required.
        idx = np.arange(t_lane) % T
        w = w[:, :, idx]                                 # (K, F, t_lane)
        w = w.reshape(K, F * t_lane)
        w = np.pad(w, ((0, K_pad - K), (0, 0)))          # zero K rows (inert)
        w_dev = jnp.asarray(w, dtype=self.compute_dtype)
        entry = (w_dev, F, K, K_pad, t_lane)
        self._weight_cache[c] = entry
        return entry

    # ---- forward -------------------------------------------------------------
    def __call__(self, x):
        # x: (B, C, H, W) float32
        x = jnp.asarray(x, jnp.float32)
        B, C, H, W = x.shape
        kh, kw = self.kernel_size
        ph, pw = self._padding

        w_dev, F, K, K_pad, t_lane = self._get_folded_weights(C)

        # reflect padding (matches F.pad mode='reflect' for square kernels)
        x_pad = jnp.pad(x, ((0, 0), (0, 0), (ph, ph), (pw, pw)), mode='reflect')

        # im2col: K index order = (c, di, dj) -- must match weight fold above.
        # TODO(synk): avoid materializing the kh*kw-inflated patch matrix in HBM
        # (fused shift-and-matmul over x_pad would cut HBM reads by kh*kw).
        cols = jnp.stack(
            [x_pad[:, :, di:di + H, dj:dj + W]
             for di in range(kh) for dj in range(kw)],
            axis=-1)                                          # (B, C, H, W, kh*kw)
        patches = jnp.transpose(cols, (0, 2, 3, 1, 4)).reshape(B * H * W, K)

        N = B * H * W
        tile_n = self.TILE_N
        if N <= tile_n:
            tile_n = max(16, _round_up(N, 16))
        N_pad = _round_up(N, tile_n)

        patches_p = jnp.pad(patches, ((0, N_pad - N), (0, K_pad - K)))
        patches_p = patches_p.astype(self.compute_dtype)

        out_flat = dgmf_conv_max(patches_p, w_dev, F, t_lane, tile_n)  # (N_pad,F)
        out = out_flat[:N].reshape(B, H, W, F)
        return jnp.transpose(out, (0, 3, 1, 2))               # (B, n_filters, H, W)


if __name__ == "__main__":
    B, C, H, W = 2, 4, 16, 16
    kernel_size = (5, 5)
    sigmas = [1.0, 2.0]
    alphas = [0.05, 0.1]
    n_orientations = 8

    key = jax.random.PRNGKey(0)
    x = jax.random.uniform(key, (B, C, H, W), dtype=jnp.float32)

    module = ApplyDGMFPallas(kernel_size, sigmas, alphas,
                             n_orientations=n_orientations, order=0)
    out = module(x)
    out = jax.block_until_ready(out)
    assert out.shape == (B, len(sigmas), H, W), out.shape
    assert out.dtype == jnp.float32
    assert bool(jnp.all(jnp.isfinite(out)))

    # second call exercises the cached weight path
    out2 = jax.block_until_ready(module(x))
    assert out2.shape == out.shape
    print("KERNEL_OK")
</pallas_src>

<mosaic_0001>
module attributes {stable_mosaic.version = 11 : i64} {
  func.func @_dgmf_kernel(%arg0: i32, %arg1: memref<512x128xbf16, #tpu.memory_space<vmem>>, %arg2: memref<128x256xbf16, #tpu.memory_space<vmem>>, %arg3: memref<512x2xf32, #tpu.memory_space<vmem>>) attributes {dimension_semantics = [#tpu.dimension_semantics<parallel>], iteration_bounds = array<i64: 1>, scalar_prefetch = 0 : i64, scratch_operands = 0 : i64, tpu.core_type = #tpu.core_type<tc>, window_params = [{transform_indices = @transform_0, window_bounds = array<i64: 512, 128>}, {pipeline_mode = #tpu.pipeline_mode<synchronous>, transform_indices = @transform_1, window_bounds = array<i64: 128, 256>}, {transform_indices = @transform_2, window_bounds = array<i64: 512, 2>}]} {
    %c0 = arith.constant 0 : index
    %c0_0 = arith.constant 0 : index
    %0 = vector.load %arg1[%c0, %c0_0] : memref<512x128xbf16, #tpu.memory_space<vmem>>, vector<512x128xbf16>
    %c0_1 = arith.constant 0 : index
    %c0_2 = arith.constant 0 : index
    %1 = vector.load %arg2[%c0_1, %c0_2] : memref<128x256xbf16, #tpu.memory_space<vmem>>, vector<128x256xbf16>
    %cst = arith.constant dense<0.000000e+00> : vector<512x256xf32>
    %2 = tpu.matmul %0, %1, %cst {dimension_numbers = #tpu.dot_dimension_numbers<[1], [0], [0], [1], [0, 0, 1, 1], [], []>} : vector<512x128xbf16>, vector<128x256xbf16>, vector<512x256xf32> -> vector<512x256xf32>
    %3 = vector.extract_strided_slice %2 {offsets = [0, 0], sizes = [512, 128], strides = [1, 1]} : vector<512x256xf32> to vector<512x128xf32>
    %cst_3 = arith.constant dense<0xFF800000> : vector<512xf32>
    %4 = vector.multi_reduction <maximumf>, %3, %cst_3 [1] : vector<512x128xf32> to vector<512xf32>
    %5 = vector.shape_cast %4 : vector<512xf32> to vector<512x1xf32>
    %6 = vector.extract_strided_slice %2 {offsets = [0, 128], sizes = [512, 128], strides = [1, 1]} : vector<512x256xf32> to vector<512x128xf32>
    %cst_4 = arith.constant dense<0xFF800000> : vector<512xf32>
    %7 = vector.multi_reduction <maximumf>, %6, %cst_4 [1] : vector<512x128xf32> to vector<512xf32>
    %8 = vector.shape_cast %7 : vector<512xf32> to vector<512x1xf32>
    %9 = tpu.concatenate %5, %8 in 1 : vector<512x1xf32>, vector<512x1xf32> -> vector<512x2xf32>
    %c0_5 = arith.constant 0 : index
    %c0_6 = arith.constant 0 : index
    %10 = vector.load %arg3[%c0_5, %c0_6] : memref<512x2xf32, #tpu.memory_space<vmem>>, vector<512x2xf32>
    tpu.vector_store %arg3[%c0_5, %c0_6], %9 {strides = array<i32>} : memref<512x2xf32, #tpu.memory_space<vmem>>, vector<512x2xf32>,
    return
  }
  func.func @transform_0(%arg0: i32) -> (i32, i32) {
    %c0_i32 = arith.constant 0 : i32
    %c0_i32_0 = arith.constant 0 : i32
    return %arg0, %c0_i32 : i32, i32
  }
  func.func @transform_1(%arg0: i32) -> (i32, i32) {
    %c0_i32 = arith.constant 0 : i32
    %c0_i32_0 = arith.constant 0 : i32
    %c0_i32_1 = arith.constant 0 : i32
    return %c0_i32, %c0_i32_0 : i32, i32
  }
  func.func @transform_2(%arg0: i32) -> (i32, i32) {
    %c0_i32 = arith.constant 0 : i32
    %c0_i32_0 = arith.constant 0 : i32
    return %arg0, %c0_i32 : i32, i32
  }
}

</mosaic_0001>

<bundles_post_ra>
// kernel: tpu_custom_call.1
= control target key start
LH: loop header
LB: loop body
LE: loop exit
PB: predicated region body
PF: predicated region fallthrough
CT: control target
= control target key end

     0   :  { %7 = vsyncpa [#allocation3], 0  ;;  %s1971_s0 = inlined_call_operand.hbm [shape: bf16[512,128], index: 0, kind: input, shape index: {}]   ;;  %s1972_s1 = inlined_call_operand.hbm [shape: bf16[128,256], index: 1, kind: input, shape index: {}]   ;;  %s1973_s2 = inlined_call_operand.vmem [shape: f32[512,2], index: 2, kind: output, shape index: {}]  }
   0x1   :  { %8 = vsyncpa [#allocation5], 0  ;;  %s1312_s9 = smov [#allocation2]   ;;  %s1264_s13 = scalar_lea.hbm %s1971_s0, 4096 }
   0x2   :  { %s14_s10 = sshll.u32 %s1312_s9, 4  ;;  %p1265_p0 = scmp.ne.s32.totalorder %s1971_s0, %s1264_s13  ;;  %s15_s10 = int_to_ptr.vmem [resolvable:$true] %s14_s10 }
   0x3   :  { %p1268_p1 = scmp.lt.u32.totalorder %s1264_s13, %s1971_s0 }
   0x5   :  { %p1270_p2 = pnand %p1268_p1, %p1265_p0 }
   0x7   :  { %1273 = shalt.err (!%p1270_p2)
}
   0x8   :  { %s1274_s18 = scalar_lea.vmem %s15_s10, 4096  ;;  %p1279_p4 = scmp.lt.s32.totalorder %s15_s10, %s15_s10 }
   0x9   :  { %p1275_p3 = scmp.ne.s32.totalorder %s15_s10, %s1274_s18  ;;  %p1280_p5 = scmp.lt.s32.totalorder %s1274_s18, %s1274_s18 }
   0xb   :  { %p1281_p6 = por %p1280_p5, %p1279_p4 }
   0xd   :  { %p1282_p7 = pnand %p1281_p6, %p1275_p3 }
   0xf   :  { %1285 = shalt.err (!%p1282_p7)
}
  0x10   :  { %s1313_s19 = smov 64   ;;  %s1314_s20 = smov 4  }
  0x11   :  { %20 = dma.hbm_to_vmem [thread:$0]  %s1971_s0, 4096, %s15_s10, [#allocation3], %s1313_s19, %s1313_s19, %s1314_s20  }
  0x12   :  { %s1315_s23 = smov [#allocation4]   ;;  %s1286_s27 = scalar_lea.hbm %s1972_s1, 2048 }
  0x13   :  { %s26_s24 = sshll.u32 %s1315_s23, 4  ;;  %p1287_p8 = scmp.ne.s32.totalorder %s1972_s1, %s1286_s27  ;;  %s27_s24 = int_to_ptr.vmem [resolvable:$true] %s26_s24 }
  0x14   :  { %p1290_p9 = scmp.lt.u32.totalorder %s1286_s27, %s1972_s1 }
  0x16   :  { %p1292_p10 = pnand %p1290_p9, %p1287_p8 }
  0x18   :  { %1295 = shalt.err (!%p1292_p10)
}
  0x19   :  { %s1296_s4 = scalar_lea.vmem %s27_s24, 2048  ;;  %p1301_p12 = scmp.lt.s32.totalorder %s27_s24, %s27_s24 }
  0x1a   :  { %p1297_p11 = scmp.ne.s32.totalorder %s27_s24, %s1296_s4  ;;  %p1302_p13 = scmp.lt.s32.totalorder %s1296_s4, %s1296_s4 }
  0x1c   :  { %p1303_p0 = por %p1302_p13, %p1301_p12 }
  0x1e   :  { %p1304_p1 = pnand %p1303_p0, %p1297_p11 }
  0x20   :  { %1307 = shalt.err (!%p1304_p1)
}
  0x21   :  { %s1316_s0 = smov 128   ;;  %s1317_s5 = smov 8  }
  0x22   :  { %32 = dma.hbm_to_vmem [thread:$0]  %s1972_s1, 2048, %s27_s24, [#allocation5], %s1316_s0, %s1316_s0, %s1317_s5  }
  0x23   :  { %1308 = dma.done.wait [#allocation3], 4096  }
  0x24   :  { %1309 = vsyncadd [#allocation3], 4294963200 }
  0x25   :  { %1310 = dma.done.wait [#allocation5], 2048  }
  0x26   :  { %1311 = vsyncadd [#allocation5], 4294965248  ;;  %v1318_v0 = vmov 0   ;;  %v1208_v1 = vld [vmem:[#allocation4 + $0x4] ss:$8 sps:$4 sm:$0xff]   ;;  %v1236_v21 = vld [vmem:[#allocation2 + $0x10] sm:$0xff]  }
  0x27   :  { %424 = vmatprep.mubr.bf16.mxu0 %v1318_v0  ;;  %584 = vmatprep.mubr.bf16.mxu1 %v1318_v0  ;;  %v1210_v2 = vld [vmem:[#allocation4] ss:$8 sps:$4 sm:$0xff]   ;;  %v1211_v3 = vld [vmem:[#allocation4 + $0x14] ss:$8 sps:$4 sm:$0xff]   ;;  %v1213_v4 = vld [vmem:[#allocation4 + $0x10] ss:$8 sps:$4 sm:$0xff]  }
  0x28   :  { %392 = vmatprep.subr.bf16.mxu0 %v1208_v1  ;;  %1185 = vmatprep.subr.bf16.mxu1 %v1208_v1  ;;  %v1214_v5 = vld [vmem:[#allocation4 + $0x24] ss:$8 sps:$4 sm:$0xff]   ;;  %v1216_v6 = vld [vmem:[#allocation4 + $0x20] ss:$8 sps:$4 sm:$0xff]   ;;  %v1217_v7 = vld [vmem:[#allocation4 + $0x34] ss:$8 sps:$4 sm:$0xff]  }
  0x29   :  { %393 = vmatpush1.bf16.msra.mxu0 %v1210_v2  ;;  %1193 = vmatpush1.bf16.msra.mxu1 %v1210_v2  ;;  %v1219_v8 = vld [vmem:[#allocation4 + $0x30] ss:$8 sps:$4 sm:$0xff]   ;;  %v1220_v9 = vld [vmem:[#allocation4 + $0x44] ss:$8 sps:$4 sm:$0xff]   ;;  %v1222_v10 = vld [vmem:[#allocation4 + $0x40] ss:$8 sps:$4 sm:$0xff]  }
  0x2a   :  { %394 = vmatprep.subr.bf16.mxu0 %v1211_v3  ;;  %1186 = vmatprep.subr.bf16.mxu1 %v1211_v3  ;;  %v1223_v11 = vld [vmem:[#allocation4 + $0x54] ss:$8 sps:$4 sm:$0xff]   ;;  %v1225_v12 = vld [vmem:[#allocation4 + $0x50] ss:$8 sps:$4 sm:$0xff]   ;;  %v1226_v13 = vld [vmem:[#allocation4 + $0x64] ss:$8 sps:$4 sm:$0xff]  }
  0x2b   :  { %v1228_v14 = vld [vmem:[#allocation4 + $0x60] ss:$8 sps:$4 sm:$0xff]   ;;  %v1229_v15 = vld [vmem:[#allocation4 + $0x74] ss:$8 sps:$4 sm:$0xff]   ;;  %v1231_v16 = vld [vmem:[#allocation4 + $0x70] ss:$8 sps:$4 sm:$0xff]  }
  0x2c   :  { %v1232_v17 = vld [vmem:[#allocation2] sm:$0xff]   ;;  %v1234_v19 = vld [vmem:[#allocation2 + $0x8] sm:$0xff]   ;;  %v1237_v22 = vld [vmem:[#allocation2 + $0x90] sm:$0xff]   ;;  %vm1001_vm0 = vcmask 7168   ;;  %vm1066_vm1 = vcmask 15360  }
  0x2d   :  { %395 = vmatpush1.bf16.msra.mxu0 %v1213_v4  ;;  %1194 = vmatpush1.bf16.msra.mxu1 %v1213_v4  ;;  %v1233_v18 = vld [vmem:[#allocation2 + $0x80] sm:$0xff]   ;;  %v1235_v20 = vld [vmem:[#allocation2 + $0x88] sm:$0xff]   ;;  %v1238_v23 = vld [vmem:[#allocation2 + $0x18] sm:$0xff]  }
  0x2e   :  { %396 = vmatprep.subr.bf16.mxu0 %v1214_v5  ;;  %1187 = vmatprep.subr.bf16.mxu1 %v1214_v5  ;;  %v1239_v24 = vld [vmem:[#allocation2 + $0x98] sm:$0xff]   ;;  %v1240_v25 = vld [vmem:[#allocation2 + $0x20] sm:$0xff]   ;;  %v1242_v27 = vld [vmem:[#allocation2 + $0x28] sm:$0xff]  }
  0x2f   :  { %v1241_v26 = vld [vmem:[#allocation2 + $0xa0] sm:$0xff]   ;;  %v1243_v28 = vld [vmem:[#allocation2 + $0xa8] sm:$0xff]   ;;  %v1244_v29 = vld [vmem:[#allocation2 + $0x30] sm:$0xff]  }
  0x30   :  { %v1245_v30 = vld [vmem:[#allocation2 + $0xb0] sm:$0xff]   ;;  %v1246_v31 = vld [vmem:[#allocation2 + $0x38] sm:$0xff]   ;;  %v1248_v33 = vld [vmem:[#allocation2 + $0x40] sm:$0xff]  }
  0x31   :  { %397 = vmatpush1.bf16.msra.mxu0 %v1216_v6  ;;  %1195 = vmatpush1.bf16.msra.mxu1 %v1216_v6  ;;  %v1247_v32 = vld [vmem:[#allocation2 + $0xb8] sm:$0xff]   ;;  %v1249_v34 = vld [vmem:[#allocation2 + $0xc0] sm:$0xff]   ;;  %v1250_v35 = vld [vmem:[#allocation2 + $0x48] sm:$0xff]  }
  0x32   :  { %398 = vmatprep.subr.bf16.mxu0 %v1217_v7  ;;  %1188 = vmatprep.subr.bf16.mxu1 %v1217_v7  ;;  %v1251_v36 = vld [vmem:[#allocation2 + $0xc8] sm:$0xff]   ;;  %v1252_v37 = vld [vmem:[#allocation2 + $0x50] sm:$0xff]   ;;  %v1254_v39 = vld [vmem:[#allocation2 + $0x58] sm:$0xff]  }
  0x33   :  { %v1253_v38 = vld [vmem:[#allocation2 + $0xd0] sm:$0xff]   ;;  %v1255_v40 = vld [vmem:[#allocation2 + $0xd8] sm:$0xff]   ;;  %v1256_v41 = vld [vmem:[#allocation2 + $0x60] sm:$0xff]  }
  0x34   :  { %v1257_v42 = vld [vmem:[#allocation2 + $0xe0] sm:$0xff]   ;;  %v1258_v43 = vld [vmem:[#allocation2 + $0x68] sm:$0xff]   ;;  %v1260_v45 = vld [vmem:[#allocation2 + $0x70] sm:$0xff]  }
  0x35   :  { %399 = vmatpush1.bf16.msra.mxu0 %v1219_v8  ;;  %1196 = vmatpush1.bf16.msra.mxu1 %v1219_v8  ;;  %v1259_v44 = vld [vmem:[#allocation2 + $0xe8] sm:$0xff]   ;;  %v1261_v46 = vld [vmem:[#allocation2 + $0xf0] sm:$0xff]   ;;  %v1262_v47 = vld [vmem:[#allocation2 + $0x78] sm:$0xff]  }
  0x36   :  { %400 = vmatprep.subr.bf16.mxu0 %v1220_v9  ;;  %1189 = vmatprep.subr.bf16.mxu1 %v1220_v9  ;;  %v1263_v48 = vld [vmem:[#allocation2 + $0xf8] sm:$0xff]  }
  0x39   :  { %401 = vmatpush1.bf16.msra.mxu0 %v1222_v10  ;;  %1197 = vmatpush1.bf16.msra.mxu1 %v1222_v10 }
  0x3a   :  { %402 = vmatprep.subr.bf16.mxu0 %v1223_v11  ;;  %1190 = vmatprep.subr.bf16.mxu1 %v1223_v11 }
  0x3d   :  { %403 = vmatpush1.bf16.msra.mxu0 %v1225_v12  ;;  %1198 = vmatpush1.bf16.msra.mxu1 %v1225_v12 }
  0x3e   :  { %404 = vmatprep.subr.bf16.mxu0 %v1226_v13  ;;  %1191 = vmatprep.subr.bf16.mxu1 %v1226_v13 }
  0x41   :  { %405 = vmatpush1.bf16.msra.mxu0 %v1228_v14  ;;  %1199 = vmatpush1.bf16.msra.mxu1 %v1228_v14 }
  0x42   :  { %406 = vmatprep.subr.bf16.mxu0 %v1229_v15  ;;  %1192 = vmatprep.subr.bf16.mxu1 %v1229_v15 }
  0x45   :  { %407 = vmatpush1.bf16.msra.mxu0 %v1231_v16  ;;  %1200 = vmatpush1.bf16.msra.mxu1 %v1231_v16 }
  0x48   :  { %425 = vmatmul.mubr.bf16.vlgmr.msra.gmra.mrb[0].mxu0 %v1232_v17  ;;  %585 = vmatmul.mubr.bf16.vlgmr.msra.gmra.mrb[0].mxu1 %v1233_v18 }
  0x49   :  { %434 = vmatprep.mubr.bf16.mxu0 %v1318_v0  ;;  %594 = vmatprep.mubr.bf16.mxu1 %v1318_v0 }
  0x50   :  { %435 = vmatmul.mubr.bf16.gmra.mrb[4].mxu0 %v1234_v19  ;;  %595 = vmatmul.mubr.bf16.gmra.mrb[4].mxu1 %v1235_v20 }
  0x51   :  { %444 = vmatprep.mubr.bf16.mxu0 %v1318_v0  ;;  %604 = vmatprep.mubr.bf16.mxu1 %v1318_v0 }
  0x58   :  { %445 = vmatmul.mubr.bf16.gmra.mrb[8].mxu0 %v1236_v21  ;;  %605 = vmatmul.mubr.bf16.gmra.mrb[8].mxu1 %v1237_v22 }
  0x59   :  { %454 = vmatprep.mubr.bf16.mxu0 %v1318_v0  ;;  %614 = vmatprep.mubr.bf16.mxu1 %v1318_v0 }
  0x60   :  { %455 = vmatmul.mubr.bf16.gmra.mrb[12].mxu0 %v1238_v23  ;;  %615 = vmatmul.mubr.bf16.gmra.mrb[12].mxu1 %v1239_v24 }
  0x61   :  { %464 = vmatprep.mubr.bf16.mxu0 %v1318_v0  ;;  %624 = vmatprep.mubr.bf16.mxu1 %v1318_v0 }
  0x68   :  { %465 = vmatmul.mubr.bf16.gmra.mrb[16].mxu0 %v1240_v25  ;;  %625 = vmatmul.mubr.bf16.gmra.mrb[16].mxu1 %v1241_v26 }
  0x69   :  { %474 = vmatprep.mubr.bf16.mxu0 %v1318_v0  ;;  %634 = vmatprep.mubr.bf16.mxu1 %v1318_v0 }
  0x70   :  { %475 = vmatmul.mubr.bf16.gmra.mrb[20].mxu0 %v1242_v27  ;;  %635 = vmatmul.mubr.bf16.gmra.mrb[20].mxu1 %v1243_v28 }
  0x71   :  { %484 = vmatprep.mubr.bf16.mxu0 %v1318_v0  ;;  %644 = vmatprep.mubr.bf16.mxu1 %v1318_v0 }
  0x78   :  { %485 = vmatmul.mubr.bf16.gmra.mrb[24].mxu0 %v1244_v29  ;;  %645 = vmatmul.mubr.bf16.gmra.mrb[24].mxu1 %v1245_v30 }
  0x79   :  { %494 = vmatprep.mubr.bf16.mxu0 %v1318_v0  ;;  %654 = vmatprep.mubr.bf16.mxu1 %v1318_v0 }
  0x80   :  { %495 = vmatmul.mubr.bf16.gmra.mrb[28].mxu0 %v1246_v31  ;;  %655 = vmatmul.mubr.bf16.gmra.mrb[28].mxu1 %v1247_v32 }
  0x81   :  { %504 = vmatprep.mubr.bf16.mxu0 %v1318_v0  ;;  %664 = vmatprep.mubr.bf16.mxu1 %v1318_v0 }
  0x88   :  { %505 = vmatmul.mubr.bf16.gmra.mrb[32].mxu0 %v1248_v33  ;;  %665 = vmatmul.mubr.bf16.gmra.mrb[32].mxu1 %v1249_v34 }
  0x89   :  { %514 = vmatprep.mubr.bf16.mxu0 %v1318_v0  ;;  %674 = vmatprep.mubr.bf16.mxu1 %v1318_v0 }
  0x90   :  { %515 = vmatmul.mubr.bf16.gmra.mrb[36].mxu0 %v1250_v35  ;;  %675 = vmatmul.mubr.bf16.gmra.mrb[36].mxu1 %v1251_v36 }
  0x91   :  { %524 = vmatprep.mubr.bf16.mxu0 %v1318_v0  ;;  %684 = vmatprep.mubr.bf16.mxu1 %v1318_v0 }
  0x98   :  { %525 = vmatmul.mubr.bf16.gmra.mrb[40].mxu0 %v1252_v37  ;;  %685 = vmatmul.mubr.bf16.gmra.mrb[40].mxu1 %v1253_v38 }
  0x99   :  { %534 = vmatprep.mubr.bf16.mxu0 %v1318_v0  ;;  %694 = vmatprep.mubr.bf16.mxu1 %v1318_v0 }
  0xa0   :  { %535 = vmatmul.mubr.bf16.gmra.mrb[44].mxu0 %v1254_v39  ;;  %695 = vmatmul.mubr.bf16.gmra.mrb[44].mxu1 %v1255_v40 }
  0xa1   :  { %544 = vmatprep.mubr.bf16.mxu0 %v1318_v0  ;;  %704 = vmatprep.mubr.bf16.mxu1 %v1318_v0 }
  0xa8   :  { %545 = vmatmul.mubr.bf16.gmra.mrb[48].mxu0 %v1256_v41  ;;  %705 = vmatmul.mubr.bf16.gmra.mrb[48].mxu1 %v1257_v42 }
  0xa9   :  { %554 = vmatprep.mubr.bf16.mxu0 %v1318_v0  ;;  %714 = vmatprep.mubr.bf16.mxu1 %v1318_v0 }
  0xb0   :  { %555 = vmatmul.mubr.bf16.gmra.mrb[52].mxu0 %v1258_v43  ;;  %715 = vmatmul.mubr.bf16.gmra.mrb[52].mxu1 %v1259_v44 }
  0xb1   :  { %564 = vmatprep.mubr.bf16.mxu0 %v1318_v0  ;;  %724 = vmatprep.mubr.bf16.mxu1 %v1318_v0 }
  0xb8   :  { %565 = vmatmul.mubr.bf16.gmra.mrb[56].mxu0 %v1260_v45  ;;  %725 = vmatmul.mubr.bf16.gmra.mrb[56].mxu1 %v1261_v46 }
  0xb9   :  { %574 = vmatprep.mubr.bf16.mxu0 %v1318_v0  ;;  %734 = vmatprep.mubr.bf16.mxu1 %v1318_v0 }
  0xc0   :  { %575 = vmatmul.mubr.bf16.gmra.mrb[60].mxu0 %v1262_v47  ;;  %735 = vmatmul.mubr.bf16.gmra.mrb[60].mxu1 %v1263_v48 }
 0x11b   :  { %v426_v49 = vpop.f32.mrb[0].mxu0  ;;  %v586_v50 = vpop.f32.mrb[0].mxu1 }
 0x11c   :  { %v588_v51 = vpop.f32.mrb[1].mxu1  ;;  %745 = vmax.xlane.f32.xlu0 %v426_v49  ;;  %v428_v52 = vpop.f32.mrb[1].mxu0 }
 0x11d   :  { %v430_v53 = vpop.f32.mrb[2].mxu0  ;;  %v590_v54 = vpop.f32.mrb[2].mxu1 }
 0x11e   :  { %811 = vmax.xlane.f32.xlu1 %v590_v54  ;;  %v432_v55 = vpop.f32.mrb[3].mxu0  ;;  %v592_v56 = vpop.f32.mrb[3].mxu1 }
 0x120   :  { %809 = vmax.xlane.f32.xlu0 %v586_v50 }
 0x122   :  { %875 = vmax.xlane.f32.xlu1 %v432_v55 }
 0x123   :  { %v436_v57 = vpop.f32.mrb[4].mxu0  ;;  %v596_v58 = vpop.f32.mrb[4].mxu1 }
 0x124   :  { %873 = vmax.xlane.f32.xlu0 %v428_v52  ;;  %v438_v59 = vpop.f32.mrb[5].mxu0  ;;  %v598_v60 = vpop.f32.mrb[5].mxu1 }
 0x125   :  { %v440_v61 = vpop.f32.mrb[6].mxu0  ;;  %v600_v62 = vpop.f32.mrb[6].mxu1 }
 0x126   :  { %939 = vmax.xlane.f32.xlu1 %v592_v56  ;;  %v442_v63 = vpop.f32.mrb[7].mxu0  ;;  %v602_v0 = vpop.f32.mrb[7].mxu1 }
 0x128   :  { %937 = vmax.xlane.f32.xlu0 %v588_v51 }
 0x12a   :  { %749 = vmax.xlane.f32.xlu1 %v436_v57 }
 0x12b   :  { %v446_v1 = vpop.f32.mrb[8].mxu0  ;;  %v606_v2 = vpop.f32.mrb[8].mxu1 }
 0x12c   :  { %747 = vmax.xlane.f32.xlu0 %v430_v53  ;;  %v448_v3 = vpop.f32.mrb[9].mxu0  ;;  %v608_v4 = vpop.f32.mrb[9].mxu1 }
 0x12d   :  { %v450_v5 = vpop.f32.mrb[10].mxu0  ;;  %v610_v6 = vpop.f32.mrb[10].mxu1 }
 0x12e   :  { %751 = vmax.xlane.f32.xlu1 %v440_v61  ;;  %v452_v7 = vpop.f32.mrb[11].mxu0  ;;  %v612_v8 = vpop.f32.mrb[11].mxu1 }
 0x130   :  { %813 = vmax.xlane.f32.xlu0 %v596_v58 }
 0x132   :  { %815 = vmax.xlane.f32.xlu1 %v600_v62 }
 0x133   :  { %v456_v9 = vpop.f32.mrb[12].mxu0  ;;  %v616_v10 = vpop.f32.mrb[12].mxu1 }
 0x134   :  { %877 = vmax.xlane.f32.xlu0 %v438_v59  ;;  %v458_v11 = vpop.f32.mrb[13].mxu0  ;;  %v618_v12 = vpop.f32.mrb[13].mxu1 }
 0x135   :  { %v460_v13 = vpop.f32.mrb[14].mxu0  ;;  %v620_v14 = vpop.f32.mrb[14].mxu1 }
 0x136   :  { %879 = vmax.xlane.f32.xlu1 %v442_v63  ;;  %v462_v15 = vpop.f32.mrb[15].mxu0  ;;  %v622_v16 = vpop.f32.mrb[15].mxu1 }
 0x138   :  { %941 = vmax.xlane.f32.xlu0 %v598_v60 }
 0x13a   :  { %943 = vmax.xlane.f32.xlu1 %v602_v0 }
 0x13b   :  { %v466_v17 = vpop.f32.mrb[16].mxu0  ;;  %v626_v18 = vpop.f32.mrb[16].mxu1 }
 0x13c   :  { %753 = vmax.xlane.f32.xlu0 %v446_v1  ;;  %v468_v19 = vpop.f32.mrb[17].mxu0  ;;  %v1390_v20 = vpop.f32.mrb[17].mxu1 }
 0x13d   :  { %v470_v21 = vpop.f32.mrb[18].mxu0  ;;  %v630_v22 = vpop.f32.mrb[18].mxu1 }
 0x13e   :  { %755 = vmax.xlane.f32.xlu1 %v450_v5  ;;  %v472_v23 = vpop.f32.mrb[19].mxu0  ;;  %v632_v24 = vpop.f32.mrb[19].mxu1 }
 0x140   :  { %817 = vmax.xlane.f32.xlu0 %v606_v2 }
 0x142   :  { %819 = vmax.xlane.f32.xlu1 %v610_v6 }
 0x143   :  { %v476_v25 = vpop.f32.mrb[20].mxu0  ;;  %v1392_v26 = vpop.f32.mrb[20].mxu1 }
 0x144   :  { %881 = vmax.xlane.f32.xlu0 %v448_v3  ;;  %v1394_v27 = vpop.f32.mrb[21].mxu0  ;;  %v1396_v28 = vpop.f32.mrb[21].mxu1 }
 0x145   :  { %v480_v29 = vpop.f32.mrb[22].mxu0  ;;  %v1398_v30 = vpop.f32.mrb[22].mxu1 }
 0x146   :  { %883 = vmax.xlane.f32.xlu1 %v452_v7  ;;  %v1400_v31 = vpop.f32.mrb[23].mxu0  ;;  %v1402_v32 = vpop.f32.mrb[23].mxu1 }
 0x148   :  { %945 = vmax.xlane.f32.xlu0 %v608_v4 }
 0x14a   :  { %947 = vmax.xlane.f32.xlu1 %v612_v8 }
 0x14b   :  { %v1404_v33 = vpop.f32.mrb[24].mxu0  ;;  %v1406_v34 = vpop.f32.mrb[24].mxu1 }
 0x14c   :  { %757 = vmax.xlane.f32.xlu0 %v456_v9  ;;  %v1408_v35 = vpop.f32.mrb[25].mxu0  ;;  %v1410_v36 = vpop.f32.mrb[25].mxu1 }
 0x14d   :  { %v1412_v37 = vpop.f32.mrb[26].mxu0  ;;  %v1414_v38 = vpop.f32.mrb[26].mxu1 }
 0x14e   :  { %759 = vmax.xlane.f32.xlu1 %v460_v13  ;;  %v1416_v39 = vpop.f32.mrb[27].mxu0  ;;  %v1418_v40 = vpop.f32.mrb[27].mxu1 }
 0x150   :  { %821 = vmax.xlane.f32.xlu0 %v616_v10 }
 0x152   :  { %823 = vmax.xlane.f32.xlu1 %v620_v14 }
 0x153   :  { %v1420_v41 = vpop.f32.mrb[28].mxu0  ;;  %v1422_v42 = vpop.f32.mrb[28].mxu1 }
 0x154   :  { %885 = vmax.xlane.f32.xlu0 %v458_v11  ;;  %v1424_v43 = vpop.f32.mrb[29].mxu0  ;;  %v1426_v44 = vpop.f32.mrb[29].mxu1 }
 0x155   :  { %v1428_v45 = vpop.f32.mrb[30].mxu0  ;;  %v1430_v46 = vpop.f32.mrb[30].mxu1 }
 0x156   :  { %887 = vmax.xlane.f32.xlu1 %v462_v15  ;;  %v1432_v47 = vpop.f32.mrb[31].mxu0  ;;  %v1434_v48 = vpop.f32.mrb[31].mxu1 }
 0x158   :  { %949 = vmax.xlane.f32.xlu0 %v618_v12 }
 0x15a   :  { %951 = vmax.xlane.f32.xlu1 %v622_v16 }
 0x15b   :  { %v1436_v49 = vpop.f32.mrb[32].mxu0  ;;  %v1438_v50 = vpop.f32.mrb[32].mxu1 }
 0x15c   :  { %761 = vmax.xlane.f32.xlu0 %v466_v17  ;;  %v1440_v51 = vpop.f32.mrb[33].mxu0  ;;  %v1442_v52 = vpop.f32.mrb[33].mxu1 }
 0x15d   :  { %v1444_v53 = vpop.f32.mrb[34].mxu0  ;;  %v1446_v54 = vpop.f32.mrb[34].mxu1 }
 0x15e   :  { %763 = vmax.xlane.f32.xlu1 %v470_v21  ;;  %v1448_v55 = vpop.f32.mrb[35].mxu0  ;;  %v1450_v56 = vpop.f32.mrb[35].mxu1 }
 0x160   :  { %825 = vmax.xlane.f32.xlu0 %v626_v18 }
 0x162   :  { %827 = vmax.xlane.f32.xlu1 %v630_v22 }
 0x163   :  { %v1452_v57 = vpop.f32.mrb[36].mxu0  ;;  %v1454_v58 = vpop.f32.mrb[36].mxu1 }
 0x164   :  { %889 = vmax.xlane.f32.xlu0 %v468_v19  ;;  %v1456_v59 = vpop.f32.mrb[37].mxu0  ;;  %v1458_v60 = vpop.f32.mrb[37].mxu1 }
 0x165   :  { %v1460_v61 = vpop.f32.mrb[38].mxu0  ;;  %v1462_v62 = vpop.f32.mrb[38].mxu1 }
 0x166   :  { %891 = vmax.xlane.f32.xlu1 %v472_v23  ;;  %v1464_v63 = vpop.f32.mrb[39].mxu0  ;;  %v1466_v0 = vpop.f32.mrb[39].mxu1 }
 0x168   :  { %953 = vmax.xlane.f32.xlu0 %v1390_v20 }
 0x16a   :  { %955 = vmax.xlane.f32.xlu1 %v632_v24 }
 0x16b   :  { %v1469_v1 = vpop.f32.mrb[40].mxu0  ;;  %v1471_v2 = vpop.f32.mrb[40].mxu1 }
 0x16c   :  { %765 = vmax.xlane.f32.xlu0 %v476_v25  ;;  %v1473_v3 = vpop.f32.mrb[41].mxu0  ;;  %v1475_v4 = vpop.f32.mrb[41].mxu1 }
 0x16d   :  { %v1477_v5 = vpop.f32.mrb[42].mxu0  ;;  %v1479_v6 = vpop.f32.mrb[42].mxu1 }
 0x16e   :  { %767 = vmax.xlane.f32.xlu1 %v480_v29  ;;  %v1481_v7 = vpop.f32.mrb[43].mxu0  ;;  %v1483_v8 = vpop.f32.mrb[43].mxu1 }
 0x170   :  { %829 = vmax.xlane.f32.xlu0 %v1392_v26 }
 0x172   :  { %831 = vmax.xlane.f32.xlu1 %v1398_v30 }
 0x173   :  { %v1487_v9 = vpop.f32.mrb[44].mxu0  ;;  %v1489_v10 = vpop.f32.mrb[44].mxu1 }
 0x174   :  { %893 = vmax.xlane.f32.xlu0 %v1394_v27  ;;  %v1492_v11 = vpop.f32.mrb[45].mxu0  ;;  %v1494_v12 = vpop.f32.mrb[45].mxu1 }
 0x175   :  { %v1496_v13 = vpop.f32.mrb[46].mxu0  ;;  %v1498_v14 = vpop.f32.mrb[46].mxu1 }
 0x176   :  { %895 = vmax.xlane.f32.xlu1 %v1400_v31  ;;  %v1501_v15 = vpop.f32.mrb[47].mxu0  ;;  %v1503_v16 = vpop.f32.mrb[47].mxu1 }
 0x178   :  { %957 = vmax.xlane.f32.xlu0 %v1396_v28 }
 0x17a   :  { %959 = vmax.xlane.f32.xlu1 %v1402_v32 }
 0x17b   :  { %v1507_v17 = vpop.f32.mrb[48].mxu0  ;;  %v1509_v18 = vpop.f32.mrb[48].mxu1 }
 0x17c   :  { %769 = vmax.xlane.f32.xlu0 %v1404_v33  ;;  %v1512_v19 = vpop.f32.mrb[49].mxu0  ;;  %v1514_v20 = vpop.f32.mrb[49].mxu1 }
 0x17d   :  { %v1516_v21 = vpop.f32.mrb[50].mxu0  ;;  %v1518_v22 = vpop.f32.mrb[50].mxu1 }
 0x17e   :  { %771 = vmax.xlane.f32.xlu1 %v1412_v37  ;;  %v1521_v23 = vpop.f32.mrb[51].mxu0  ;;  %v1523_v24 = vpop.f32.mrb[51].mxu1 }
 0x180   :  { %833 = vmax.xlane.f32.xlu0 %v1406_v34 }
 0x182   :  { %835 = vmax.xlane.f32.xlu1 %v1414_v38 }
 0x183   :  { %v1527_v25 = vpop.f32.mrb[52].mxu0  ;;  %v1529_v26 = vpop.f32.mrb[52].mxu1 }
 0x184   :  { %897 = vmax.xlane.f32.xlu0 %v1408_v35  ;;  %v1532_v27 = vpop.f32.mrb[53].mxu0  ;;  %v1534_v28 = vpop.f32.mrb[53].mxu1 }
 0x185   :  { %v1536_v29 = vpop.f32.mrb[54].mxu0  ;;  %v1538_v30 = vpop.f32.mrb[54].mxu1 }
 0x186   :  { %899 = vmax.xlane.f32.xlu1 %v1416_v39  ;;  %v1541_v31 = vpop.f32.mrb[55].mxu0  ;;  %v1543_v32 = vpop.f32.mrb[55].mxu1 }
 0x187   :  { %1974 = vst [vmem:[#allocation8_spill] sm:$0xff] %v1543_v32 }
 0x188   :  { %961 = vmax.xlane.f32.xlu0 %v1410_v36 }
 0x18a   :  { %963 = vmax.xlane.f32.xlu1 %v1418_v40 }
 0x18b   :  { %v1547_v33 = vpop.f32.mrb[56].mxu0  ;;  %v1549_v34 = vpop.f32.mrb[56].mxu1 }
 0x18c   :  { %773 = vmax.xlane.f32.xlu0 %v1420_v41  ;;  %v1552_v35 = vpop.f32.mrb[57].mxu0  ;;  %v1554_v37 = vpop.f32.mrb[57].mxu1 }
 0x18d   :  { %1975 = vst [vmem:[#allocation9_spill] sm:$0xff] %v1552_v35  ;;  %1976 = vst [vmem:[#allocation10_spill] sm:$0xff] %v1554_v37  ;;  %v1556_v38 = vpop.f32.mrb[58].mxu0  ;;  %v1558_v39 = vpop.f32.mrb[58].mxu1 }
 0x18e   :  { %1977 = vst [vmem:[#allocation11_spill] sm:$0xff] %v1558_v39  ;;  %775 = vmax.xlane.f32.xlu1 %v1428_v45  ;;  %v1561_v32 = vpop.f32.mrb[59].mxu0  ;;  %v1563_v36 = vpop.f32.mrb[59].mxu1 }
 0x18f   :  { %1978 = vst [vmem:[#allocation12_spill] sm:$0xff] %v1563_v36 }
 0x190   :  { %837 = vmax.xlane.f32.xlu0 %v1422_v42 }
 0x192   :  { %839 = vmax.xlane.f32.xlu1 %v1430_v46 }
 0x193   :  { %v1567_v40 = vpop.f32.mrb[60].mxu0  ;;  %v1569_v41 = vpop.f32.mrb[60].mxu1 }
 0x194   :  { %901 = vmax.xlane.f32.xlu0 %v1424_v43  ;;  %v1572_v37 = vpop.f32.mrb[61].mxu0  ;;  %v1574_v35 = vpop.f32.mrb[61].mxu1 }
 0x195   :  { %v1576_v39 = vpop.f32.mrb[62].mxu0  ;;  %v1578_v45 = vpop.f32.mrb[62].mxu1 }
 0x196   :  { %903 = vmax.xlane.f32.xlu1 %v1432_v47  ;;  %v1581_v36 = vpop.f32.mrb[63].mxu0  ;;  %v1583_v42 = vpop.f32.mrb[63].mxu1 }
 0x198   :  { %965 = vmax.xlane.f32.xlu0 %v1426_v44 }
 0x19a   :  { %967 = vmax.xlane.f32.xlu1 %v1434_v48 }
 0x19c   :  { %777 = vmax.xlane.f32.xlu0 %v1436_v49 }
 0x19e   :  { %779 = vmax.xlane.f32.xlu1 %v1444_v53 }
 0x1a0   :  { %841 = vmax.xlane.f32.xlu0 %v1438_v50 }
 0x1a2   :  { %843 = vmax.xlane.f32.xlu1 %v1446_v54 }
 0x1a4   :  { %905 = vmax.xlane.f32.xlu0 %v1440_v51 }
 0x1a6   :  { %907 = vmax.xlane.f32.xlu1 %v1448_v55 }
 0x1a8   :  { %969 = vmax.xlane.f32.xlu0 %v1442_v52 }
 0x1a9   :  { %v746_v43 = vpop.xlane.xlu0 %745 }
 0x1aa   :  { %971 = vmax.xlane.f32.xlu1 %v1450_v56 }
 0x1ab   :  { %v812_v44 = vpop.xlane.xlu1 %811 }
 0x1ac   :  { %781 = vmax.xlane.f32.xlu0 %v1452_v57 }
 0x1ad   :  { %v810_v46 = vpop.xlane.xlu0 %809 }
 0x1ae   :  { %783 = vmax.xlane.f32.xlu1 %v1460_v61 }
 0x1af   :  { %v876_v47 = vpop.xlane.xlu1 %875 }
 0x1b0   :  { %845 = vmax.xlane.f32.xlu0 %v1454_v58 }
 0x1b1   :  { %v874_v48 = vpop.xlane.xlu0 %873 }
 0x1b2   :  { %v1002_v49 = vsel %vm1001_vm0, %v746_v43, %v874_v48  ;;  %847 = vmax.xlane.f32.xlu1 %v1462_v62 }
 0x1b3   :  { %1067 = vst.msk [vmem:[%s1973_s2] sm:$0xff] %vm1066_vm1, %v1002_v49  ;;  %v940_v50 = vpop.xlane.xlu1 %939 }
 0x1b4   :  { %v1035_v51 = vsel %vm1001_vm0, %v812_v44, %v940_v50  ;;  %909 = vmax.xlane.f32.xlu0 %v1456_v59 }
 0x1b5   :  { %1100 = vst.msk [vmem:[%s1973_s2 + $0x108] sm:$0xff] %vm1066_vm1, %v1035_v51  ;;  %v938_v52 = vpop.xlane.xlu0 %937 }
 0x1b6   :  { %v1034_v53 = vsel %vm1001_vm0, %v810_v46, %v938_v52  ;;  %911 = vmax.xlane.f32.xlu1 %v1464_v63 }
 0x1b7   :  { %1099 = vst.msk [vmem:[%s1973_s2 + $0x100] sm:$0xff] %vm1066_vm1, %v1034_v53  ;;  %v750_v54 = vpop.xlane.xlu1 %749 }
 0x1b8   :  { %973 = vmax.xlane.f32.xlu0 %v1458_v60 }
 0x1b9   :  { %v748_v55 = vpop.xlane.xlu0 %747 }
 0x1ba   :  { %v1003_v56 = vsel %vm1001_vm0, %v748_v55, %v876_v47  ;;  %975 = vmax.xlane.f32.xlu1 %v1466_v0  ;;  %v1979_v55 = vld [vmem:[#allocation8_spill] sm:$0xff] }
 0x1bb   :  { %1068 = vst.msk [vmem:[%s1973_s2 + $0x8] sm:$0xff] %vm1066_vm1, %v1003_v56  ;;  %v752_v57 = vpop.xlane.xlu1 %751 }
 0x1bc   :  { %785 = vmax.xlane.f32.xlu0 %v1469_v1 }
 0x1bd   :  { %v814_v58 = vpop.xlane.xlu0 %813 }
 0x1be   :  { %787 = vmax.xlane.f32.xlu1 %v1477_v5 }
 0x1bf   :  { %v816_v59 = vpop.xlane.xlu1 %815 }
 0x1c0   :  { %849 = vmax.xlane.f32.xlu0 %v1471_v2 }
 0x1c1   :  { %v878_v60 = vpop.xlane.xlu0 %877 }
 0x1c2   :  { %v1004_v61 = vsel %vm1001_vm0, %v750_v54, %v878_v60  ;;  %851 = vmax.xlane.f32.xlu1 %v1479_v6 }
 0x1c3   :  { %1069 = vst.msk [vmem:[%s1973_s2 + $0x10] sm:$0xff] %vm1066_vm1, %v1004_v61  ;;  %v880_v62 = vpop.xlane.xlu1 %879 }
 0x1c4   :  { %v1005_v63 = vsel %vm1001_vm0, %v752_v57, %v880_v62  ;;  %913 = vmax.xlane.f32.xlu0 %v1473_v3 }
 0x1c5   :  { %1070 = vst.msk [vmem:[%s1973_s2 + $0x18] sm:$0xff] %vm1066_vm1, %v1005_v63  ;;  %v942_v0 = vpop.xlane.xlu0 %941 }
 0x1c6   :  { %v1036_v1 = vsel %vm1001_vm0, %v814_v58, %v942_v0  ;;  %915 = vmax.xlane.f32.xlu1 %v1481_v7  ;;  %v1982_v0 = vld [vmem:[#allocation10_spill] sm:$0xff] }
 0x1c7   :  { %1101 = vst.msk [vmem:[%s1973_s2 + $0x110] sm:$0xff] %vm1066_vm1, %v1036_v1  ;;  %v944_v2 = vpop.xlane.xlu1 %943 }
 0x1c8   :  { %v1037_v5 = vsel %vm1001_vm0, %v816_v59, %v944_v2  ;;  %977 = vmax.xlane.f32.xlu0 %v1475_v4  ;;  %v1980_v59 = vld [vmem:[#allocation11_spill] sm:$0xff]  ;;  %v1983_v2 = vld [vmem:[#allocation12_spill] sm:$0xff] }
 0x1c9   :  { %1102 = vst.msk [vmem:[%s1973_s2 + $0x118] sm:$0xff] %vm1066_vm1, %v1037_v5  ;;  %v754_v3 = vpop.xlane.xlu0 %753 }
 0x1ca   :  { %979 = vmax.xlane.f32.xlu1 %v1483_v8 }
 0x1cb   :  { %v756_v6 = vpop.xlane.xlu1 %755 }
 0x1cc   :  { %789 = vmax.xlane.f32.xlu0 %v1487_v9 }
 0x1cd   :  { %v818_v7 = vpop.xlane.xlu0 %817 }
 0x1ce   :  { %791 = vmax.xlane.f32.xlu1 %v1496_v13 }
 0x1cf   :  { %v820_v43 = vpop.xlane.xlu1 %819 }
 0x1d0   :  { %853 = vmax.xlane.f32.xlu0 %v1489_v10 }
 0x1d1   :  { %v882_v44 = vpop.xlane.xlu0 %881 }
 0x1d2   :  { %v1006_v4 = vsel %vm1001_vm0, %v754_v3, %v882_v44  ;;  %855 = vmax.xlane.f32.xlu1 %v1498_v14 }
 0x1d3   :  { %1071 = vst.msk [vmem:[%s1973_s2 + $0x20] sm:$0xff] %vm1066_vm1, %v1006_v4  ;;  %v884_v8 = vpop.xlane.xlu1 %883 }
 0x1d4   :  { %v1007_v46 = vsel %vm1001_vm0, %v756_v6, %v884_v8  ;;  %917 = vmax.xlane.f32.xlu0 %v1492_v11 }
 0x1d5   :  { %1072 = vst.msk [vmem:[%s1973_s2 + $0x28] sm:$0xff] %vm1066_vm1, %v1007_v46  ;;  %v946_v9 = vpop.xlane.xlu0 %945 }
 0x1d6   :  { %v1038_v10 = vsel %vm1001_vm0, %v818_v7, %v946_v9  ;;  %919 = vmax.xlane.f32.xlu1 %v1501_v15 }
 0x1d7   :  { %1103 = vst.msk [vmem:[%s1973_s2 + $0x120] sm:$0xff] %vm1066_vm1, %v1038_v10  ;;  %v948_v13 = vpop.xlane.xlu1 %947 }
 0x1d8   :  { %v1039_v14 = vsel %vm1001_vm0, %v820_v43, %v948_v13  ;;  %981 = vmax.xlane.f32.xlu0 %v1494_v12 }
 0x1d9   :  { %1104 = vst.msk [vmem:[%s1973_s2 + $0x128] sm:$0xff] %vm1066_vm1, %v1039_v14  ;;  %v758_v11 = vpop.xlane.xlu0 %757 }
 0x1da   :  { %983 = vmax.xlane.f32.xlu1 %v1503_v16 }
 0x1db   :  { %v760_v47 = vpop.xlane.xlu1 %759 }
 0x1dc   :  { %793 = vmax.xlane.f32.xlu0 %v1507_v17 }
 0x1dd   :  { %v822_v15 = vpop.xlane.xlu0 %821 }
 0x1de   :  { %795 = vmax.xlane.f32.xlu1 %v1516_v21 }
 0x1df   :  { %v824_v48 = vpop.xlane.xlu1 %823 }
 0x1e0   :  { %857 = vmax.xlane.f32.xlu0 %v1509_v18 }
 0x1e1   :  { %v886_v49 = vpop.xlane.xlu0 %885 }
 0x1e2   :  { %v1008_v12 = vsel %vm1001_vm0, %v758_v11, %v886_v49  ;;  %859 = vmax.xlane.f32.xlu1 %v1518_v22 }
 0x1e3   :  { %1073 = vst.msk [vmem:[%s1973_s2 + $0x30] sm:$0xff] %vm1066_vm1, %v1008_v12  ;;  %v888_v16 = vpop.xlane.xlu1 %887 }
 0x1e4   :  { %v1009_v50 = vsel %vm1001_vm0, %v760_v47, %v888_v16  ;;  %921 = vmax.xlane.f32.xlu0 %v1512_v19 }
 0x1e5   :  { %1074 = vst.msk [vmem:[%s1973_s2 + $0x38] sm:$0xff] %vm1066_vm1, %v1009_v50  ;;  %v950_v17 = vpop.xlane.xlu0 %949 }
 0x1e6   :  { %v1040_v18 = vsel %vm1001_vm0, %v822_v15, %v950_v17  ;;  %923 = vmax.xlane.f32.xlu1 %v1521_v23 }
 0x1e7   :  { %1105 = vst.msk [vmem:[%s1973_s2 + $0x130] sm:$0xff] %vm1066_vm1, %v1040_v18  ;;  %v952_v21 = vpop.xlane.xlu1 %951 }
 0x1e8   :  { %v1041_v22 = vsel %vm1001_vm0, %v824_v48, %v952_v21  ;;  %985 = vmax.xlane.f32.xlu0 %v1514_v20 }
 0x1e9   :  { %1106 = vst.msk [vmem:[%s1973_s2 + $0x138] sm:$0xff] %vm1066_vm1, %v1041_v22  ;;  %v762_v19 = vpop.xlane.xlu0 %761 }
 0x1ea   :  { %987 = vmax.xlane.f32.xlu1 %v1523_v24 }
 0x1eb   :  { %v764_v51 = vpop.xlane.xlu1 %763 }
 0x1ec   :  { %797 = vmax.xlane.f32.xlu0 %v1527_v25 }
 0x1ed   :  { %v826_v23 = vpop.xlane.xlu0 %825 }
 0x1ee   :  { %799 = vmax.xlane.f32.xlu1 %v1536_v29 }
 0x1ef   :  { %v828_v52 = vpop.xlane.xlu1 %827 }
 0x1f0   :  { %861 = vmax.xlane.f32.xlu0 %v1529_v26 }
 0x1f1   :  { %v890_v53 = vpop.xlane.xlu0 %889 }
 0x1f2   :  { %v1010_v20 = vsel %vm1001_vm0, %v762_v19, %v890_v53  ;;  %863 = vmax.xlane.f32.xlu1 %v1538_v30 }
 0x1f3   :  { %1075 = vst.msk [vmem:[%s1973_s2 + $0x40] sm:$0xff] %vm1066_vm1, %v1010_v20  ;;  %v892_v24 = vpop.xlane.xlu1 %891 }
 0x1f4   :  { %v1011_v54 = vsel %vm1001_vm0, %v764_v51, %v892_v24  ;;  %925 = vmax.xlane.f32.xlu0 %v1532_v27 }
 0x1f5   :  { %1076 = vst.msk [vmem:[%s1973_s2 + $0x48] sm:$0xff] %vm1066_vm1, %v1011_v54  ;;  %v954_v25 = vpop.xlane.xlu0 %953 }
 0x1f6   :  { %v1042_v26 = vsel %vm1001_vm0, %v826_v23, %v954_v25  ;;  %927 = vmax.xlane.f32.xlu1 %v1541_v31 }
 0x1f7   :  { %1107 = vst.msk [vmem:[%s1973_s2 + $0x140] sm:$0xff] %vm1066_vm1, %v1042_v26  ;;  %v956_v29 = vpop.xlane.xlu1 %955 }
 0x1f8   :  { %v1043_v30 = vsel %vm1001_vm0, %v828_v52, %v956_v29  ;;  %989 = vmax.xlane.f32.xlu0 %v1534_v28 }
 0x1f9   :  { %1108 = vst.msk [vmem:[%s1973_s2 + $0x148] sm:$0xff] %vm1066_vm1, %v1043_v30  ;;  %v766_v27 = vpop.xlane.xlu0 %765 }
 0x1fa   :  { %991 = vmax.xlane.f32.xlu1 %v1979_v55 }
 0x1fb   :  { %v768_v56 = vpop.xlane.xlu1 %767 }
 0x1fc   :  { %801 = vmax.xlane.f32.xlu0 %v1547_v33  ;;  %v1981_v33 = vld [vmem:[#allocation9_spill] sm:$0xff] }
 0x1fd   :  { %v830_v31 = vpop.xlane.xlu0 %829 }
 0x1fe   :  { %803 = vmax.xlane.f32.xlu1 %v1556_v38 }
 0x1ff   :  { %v832_v57 = vpop.xlane.xlu1 %831 }
 0x200   :  { %865 = vmax.xlane.f32.xlu0 %v1549_v34 }
 0x201   :  { %v894_v58 = vpop.xlane.xlu0 %893 }
 0x202   :  { %v1012_v28 = vsel %vm1001_vm0, %v766_v27, %v894_v58  ;;  %867 = vmax.xlane.f32.xlu1 %v1980_v59 }
 0x203   :  { %1077 = vst.msk [vmem:[%s1973_s2 + $0x50] sm:$0xff] %vm1066_vm1, %v1012_v28  ;;  %v896_v60 = vpop.xlane.xlu1 %895 }
 0x204   :  { %v1013_v61 = vsel %vm1001_vm0, %v768_v56, %v896_v60  ;;  %929 = vmax.xlane.f32.xlu0 %v1981_v33 }
 0x205   :  { %1078 = vst.msk [vmem:[%s1973_s2 + $0x58] sm:$0xff] %vm1066_vm1, %v1013_v61  ;;  %v958_v34 = vpop.xlane.xlu0 %957 }
 0x206   :  { %v1044_v38 = vsel %vm1001_vm0, %v830_v31, %v958_v34  ;;  %931 = vmax.xlane.f32.xlu1 %v1561_v32 }
 0x207   :  { %1109 = vst.msk [vmem:[%s1973_s2 + $0x150] sm:$0xff] %vm1066_vm1, %v1044_v38  ;;  %v960_v62 = vpop.xlane.xlu1 %959 }
 0x208   :  { %v1045_v63 = vsel %vm1001_vm0, %v832_v57, %v960_v62  ;;  %993 = vmax.xlane.f32.xlu0 %v1982_v0 }
 0x209   :  { %1110 = vst.msk [vmem:[%s1973_s2 + $0x158] sm:$0xff] %vm1066_vm1, %v1045_v63  ;;  %v770_v1 = vpop.xlane.xlu0 %769 }
 0x20a   :  { %995 = vmax.xlane.f32.xlu1 %v1983_v2 }
 0x20b   :  { %v772_v5 = vpop.xlane.xlu1 %771 }
 0x20c   :  { %805 = vmax.xlane.f32.xlu0 %v1567_v40 }
 0x20d   :  { %v834_v32 = vpop.xlane.xlu0 %833 }
 0x20e   :  { %807 = vmax.xlane.f32.xlu1 %v1576_v39 }
 0x20f   :  { %v836_v3 = vpop.xlane.xlu1 %835 }
 0x210   :  { %869 = vmax.xlane.f32.xlu0 %v1569_v41 }
 0x211   :  { %v898_v6 = vpop.xlane.xlu0 %897 }
 0x212   :  { %v1014_v7 = vsel %vm1001_vm0, %v770_v1, %v898_v6  ;;  %871 = vmax.xlane.f32.xlu1 %v1578_v45 }
 0x213   :  { %1079 = vst.msk [vmem:[%s1973_s2 + $0x60] sm:$0xff] %vm1066_vm1, %v1014_v7  ;;  %v900_v43 = vpop.xlane.xlu1 %899 }
 0x214   :  { %v1015_v44 = vsel %vm1001_vm0, %v772_v5, %v900_v43  ;;  %933 = vmax.xlane.f32.xlu0 %v1572_v37 }
 0x215   :  { %1080 = vst.msk [vmem:[%s1973_s2 + $0x68] sm:$0xff] %vm1066_vm1, %v1015_v44  ;;  %v962_v39 = vpop.xlane.xlu0 %961 }
 0x216   :  { %v1046_v40 = vsel %vm1001_vm0, %v834_v32, %v962_v39  ;;  %935 = vmax.xlane.f32.xlu1 %v1581_v36 }
 0x217   :  { %1111 = vst.msk [vmem:[%s1973_s2 + $0x160] sm:$0xff] %vm1066_vm1, %v1046_v40  ;;  %v964_v41 = vpop.xlane.xlu1 %963 }
 0x218   :  { %v1047_v45 = vsel %vm1001_vm0, %v836_v3, %v964_v41  ;;  %997 = vmax.xlane.f32.xlu0 %v1574_v35 }
 0x219   :  { %1112 = vst.msk [vmem:[%s1973_s2 + $0x168] sm:$0xff] %vm1066_vm1, %v1047_v45  ;;  %v774_v37 = vpop.xlane.xlu0 %773 }
 0x21a   :  { %999 = vmax.xlane.f32.xlu1 %v1583_v42 }
 0x21b   :  { %v776_v4 = vpop.xlane.xlu1 %775 }
 0x21d   :  { %v838_v36 = vpop.xlane.xlu0 %837 }
 0x21f   :  { %v840_v8 = vpop.xlane.xlu1 %839 }
 0x221   :  { %v902_v46 = vpop.xlane.xlu0 %901 }
 0x222   :  { %v1016_v9 = vsel %vm1001_vm0, %v774_v37, %v902_v46 }
 0x223   :  { %1081 = vst.msk [vmem:[%s1973_s2 + $0x70] sm:$0xff] %vm1066_vm1, %v1016_v9  ;;  %v904_v35 = vpop.xlane.xlu1 %903 }
 0x224   :  { %v1017_v10 = vsel %vm1001_vm0, %v776_v4, %v904_v35 }
 0x225   :  { %1082 = vst.msk [vmem:[%s1973_s2 + $0x78] sm:$0xff] %vm1066_vm1, %v1017_v10  ;;  %v966_v42 = vpop.xlane.xlu0 %965 }
 0x226   :  { %v1048_v13 = vsel %vm1001_vm0, %v838_v36, %v966_v42 }
 0x227   :  { %1113 = vst.msk [vmem:[%s1973_s2 + $0x170] sm:$0xff] %vm1066_vm1, %v1048_v13  ;;  %v968_v14 = vpop.xlane.xlu1 %967 }
 0x228   :  { %v1049_v11 = vsel %vm1001_vm0, %v840_v8, %v968_v14 }
 0x229   :  { %1114 = vst.msk [vmem:[%s1973_s2 + $0x178] sm:$0xff] %vm1066_vm1, %v1049_v11  ;;  %v778_v47 = vpop.xlane.xlu0 %777 }
 0x22b   :  { %v780_v15 = vpop.xlane.xlu1 %779 }
 0x22d   :  { %v842_v48 = vpop.xlane.xlu0 %841 }
 0x22f   :  { %v844_v49 = vpop.xlane.xlu1 %843 }
 0x231   :  { %v906_v12 = vpop.xlane.xlu0 %905 }
 0x232   :  { %v1018_v16 = vsel %vm1001_vm0, %v778_v47, %v906_v12 }
 0x233   :  { %1083 = vst.msk [vmem:[%s1973_s2 + $0x80] sm:$0xff] %vm1066_vm1, %v1018_v16  ;;  %v908_v50 = vpop.xlane.xlu1 %907 }
 0x234   :  { %v1019_v17 = vsel %vm1001_vm0, %v780_v15, %v908_v50 }
 0x235   :  { %1084 = vst.msk [vmem:[%s1973_s2 + $0x88] sm:$0xff] %vm1066_vm1, %v1019_v17  ;;  %v970_v18 = vpop.xlane.xlu0 %969 }
 0x236   :  { %v1050_v21 = vsel %vm1001_vm0, %v842_v48, %v970_v18 }
 0x237   :  { %1115 = vst.msk [vmem:[%s1973_s2 + $0x180] sm:$0xff] %vm1066_vm1, %v1050_v21  ;;  %v972_v22 = vpop.xlane.xlu1 %971 }
 0x238   :  { %v1051_v19 = vsel %vm1001_vm0, %v844_v49, %v972_v22 }
 0x239   :  { %1116 = vst.msk [vmem:[%s1973_s2 + $0x188] sm:$0xff] %vm1066_vm1, %v1051_v19  ;;  %v782_v51 = vpop.xlane.xlu0 %781 }
 0x23b   :  { %v784_v23 = vpop.xlane.xlu1 %783 }
 0x23d   :  { %v846_v52 = vpop.xlane.xlu0 %845 }
 0x23f   :  { %v848_v53 = vpop.xlane.xlu1 %847 }
 0x241   :  { %v910_v20 = vpop.xlane.xlu0 %909 }
 0x242   :  { %v1020_v24 = vsel %vm1001_vm0, %v782_v51, %v910_v20 }
 0x243   :  { %1085 = vst.msk [vmem:[%s1973_s2 + $0x90] sm:$0xff] %vm1066_vm1, %v1020_v24  ;;  %v912_v54 = vpop.xlane.xlu1 %911 }
 0x244   :  { %v1021_v25 = vsel %vm1001_vm0, %v784_v23, %v912_v54 }
 0x245   :  { %1086 = vst.msk [vmem:[%s1973_s2 + $0x98] sm:$0xff] %vm1066_vm1, %v1021_v25  ;;  %v974_v26 = vpop.xlane.xlu0 %973 }
 0x246   :  { %v1052_v29 = vsel %vm1001_vm0, %v846_v52, %v974_v26 }
 0x247   :  { %1117 = vst.msk [vmem:[%s1973_s2 + $0x190] sm:$0xff] %vm1066_vm1, %v1052_v29  ;;  %v976_v30 = vpop.xlane.xlu1 %975 }
 0x248   :  { %v1053_v27 = vsel %vm1001_vm0, %v848_v53, %v976_v30 }
 0x249   :  { %1118 = vst.msk [vmem:[%s1973_s2 + $0x198] sm:$0xff] %vm1066_vm1, %v1053_v27  ;;  %v786_v55 = vpop.xlane.xlu0 %785 }
 0x24b   :  { %v788_v56 = vpop.xlane.xlu1 %787 }
 0x24d   :  { %v850_v31 = vpop.xlane.xlu0 %849 }
 0x24f   :  { %v852_v57 = vpop.xlane.xlu1 %851 }
 0x251   :  { %v914_v58 = vpop.xlane.xlu0 %913 }
 0x252   :  { %v1022_v28 = vsel %vm1001_vm0, %v786_v55, %v914_v58 }
 0x253   :  { %1087 = vst.msk [vmem:[%s1973_s2 + $0xa0] sm:$0xff] %vm1066_vm1, %v1022_v28  ;;  %v916_v59 = vpop.xlane.xlu1 %915 }
 0x254   :  { %v1023_v60 = vsel %vm1001_vm0, %v788_v56, %v916_v59 }
 0x255   :  { %1088 = vst.msk [vmem:[%s1973_s2 + $0xa8] sm:$0xff] %vm1066_vm1, %v1023_v60  ;;  %v978_v61 = vpop.xlane.xlu0 %977 }
 0x256   :  { %v1054_v33 = vsel %vm1001_vm0, %v850_v31, %v978_v61 }
 0x257   :  { %1119 = vst.msk [vmem:[%s1973_s2 + $0x1a0] sm:$0xff] %vm1066_vm1, %v1054_v33  ;;  %v980_v34 = vpop.xlane.xlu1 %979 }
 0x258   :  { %v1055_v38 = vsel %vm1001_vm0, %v852_v57, %v980_v34 }
 0x259   :  { %1120 = vst.msk [vmem:[%s1973_s2 + $0x1a8] sm:$0xff] %vm1066_vm1, %v1055_v38  ;;  %v790_v62 = vpop.xlane.xlu0 %789 }
 0x25b   :  { %v792_v63 = vpop.xlane.xlu1 %791 }
 0x25d   :  { %v854_v0 = vpop.xlane.xlu0 %853 }
 0x25f   :  { %v856_v1 = vpop.xlane.xlu1 %855 }
 0x261   :  { %v918_v2 = vpop.xlane.xlu0 %917 }
 0x262   :  { %v1024_v5 = vsel %vm1001_vm0, %v790_v62, %v918_v2 }
 0x263   :  { %1089 = vst.msk [vmem:[%s1973_s2 + $0xb0] sm:$0xff] %vm1066_vm1, %v1024_v5  ;;  %v920_v32 = vpop.xlane.xlu1 %919 }
 0x264   :  { %v1025_v3 = vsel %vm1001_vm0, %v792_v63, %v920_v32 }
 0x265   :  { %1090 = vst.msk [vmem:[%s1973_s2 + $0xb8] sm:$0xff] %vm1066_vm1, %v1025_v3  ;;  %v982_v6 = vpop.xlane.xlu0 %981 }
 0x266   :  { %v1056_v7 = vsel %vm1001_vm0, %v854_v0, %v982_v6 }
 0x267   :  { %1121 = vst.msk [vmem:[%s1973_s2 + $0x1b0] sm:$0xff] %vm1066_vm1, %v1056_v7  ;;  %v984_v43 = vpop.xlane.xlu1 %983 }
 0x268   :  { %v1057_v44 = vsel %vm1001_vm0, %v856_v1, %v984_v43 }
 0x269   :  { %1122 = vst.msk [vmem:[%s1973_s2 + $0x1b8] sm:$0xff] %vm1066_vm1, %v1057_v44  ;;  %v794_v39 = vpop.xlane.xlu0 %793 }
 0x26b   :  { %v796_v40 = vpop.xlane.xlu1 %795 }
 0x26d   :  { %v858_v41 = vpop.xlane.xlu0 %857 }
 0x26f   :  { %v860_v45 = vpop.xlane.xlu1 %859 }
 0x271   :  { %v922_v37 = vpop.xlane.xlu0 %921 }
 0x272   :  { %v1026_v4 = vsel %vm1001_vm0, %v794_v39, %v922_v37 }
 0x273   :  { %1091 = vst.msk [vmem:[%s1973_s2 + $0xc0] sm:$0xff] %vm1066_vm1, %v1026_v4  ;;  %v924_v36 = vpop.xlane.xlu1 %923 }
 0x274   :  { %v1027_v8 = vsel %vm1001_vm0, %v796_v40, %v924_v36 }
 0x275   :  { %1092 = vst.msk [vmem:[%s1973_s2 + $0xc8] sm:$0xff] %vm1066_vm1, %v1027_v8  ;;  %v986_v46 = vpop.xlane.xlu0 %985 }
 0x276   :  { %v1058_v9 = vsel %vm1001_vm0, %v858_v41, %v986_v46 }
 0x277   :  { %1123 = vst.msk [vmem:[%s1973_s2 + $0x1c0] sm:$0xff] %vm1066_vm1, %v1058_v9  ;;  %v988_v35 = vpop.xlane.xlu1 %987 }
 0x278   :  { %v1059_v10 = vsel %vm1001_vm0, %v860_v45, %v988_v35 }
 0x279   :  { %1124 = vst.msk [vmem:[%s1973_s2 + $0x1c8] sm:$0xff] %vm1066_vm1, %v1059_v10  ;;  %v798_v42 = vpop.xlane.xlu0 %797 }
 0x27b   :  { %v800_v13 = vpop.xlane.xlu1 %799 }
 0x27d   :  { %v862_v14 = vpop.xlane.xlu0 %861 }
 0x27f   :  { %v864_v11 = vpop.xlane.xlu1 %863 }
 0x281   :  { %v926_v47 = vpop.xlane.xlu0 %925 }
 0x282   :  { %v1028_v15 = vsel %vm1001_vm0, %v798_v42, %v926_v47 }
 0x283   :  { %1093 = vst.msk [vmem:[%s1973_s2 + $0xd0] sm:$0xff] %vm1066_vm1, %v1028_v15  ;;  %v928_v48 = vpop.xlane.xlu1 %927 }
 0x284   :  { %v1029_v49 = vsel %vm1001_vm0, %v800_v13, %v928_v48 }
 0x285   :  { %1094 = vst.msk [vmem:[%s1973_s2 + $0xd8] sm:$0xff] %vm1066_vm1, %v1029_v49  ;;  %v990_v12 = vpop.xlane.xlu0 %989 }
 0x286   :  { %v1060_v16 = vsel %vm1001_vm0, %v862_v14, %v990_v12 }
 0x287   :  { %1125 = vst.msk [vmem:[%s1973_s2 + $0x1d0] sm:$0xff] %vm1066_vm1, %v1060_v16  ;;  %v992_v50 = vpop.xlane.xlu1 %991 }
 0x288   :  { %v1061_v17 = vsel %vm1001_vm0, %v864_v11, %v992_v50 }
 0x289   :  { %1126 = vst.msk [vmem:[%s1973_s2 + $0x1d8] sm:$0xff] %vm1066_vm1, %v1061_v17  ;;  %v802_v18 = vpop.xlane.xlu0 %801 }
 0x28b   :  { %v804_v21 = vpop.xlane.xlu1 %803 }
 0x28d   :  { %v866_v22 = vpop.xlane.xlu0 %865 }
 0x28f   :  { %v868_v19 = vpop.xlane.xlu1 %867 }
 0x291   :  { %v930_v51 = vpop.xlane.xlu0 %929 }
 0x292   :  { %v1030_v23 = vsel %vm1001_vm0, %v802_v18, %v930_v51 }
 0x293   :  { %1095 = vst.msk [vmem:[%s1973_s2 + $0xe0] sm:$0xff] %vm1066_vm1, %v1030_v23  ;;  %v932_v52 = vpop.xlane.xlu1 %931 }
 0x294   :  { %v1031_v53 = vsel %vm1001_vm0, %v804_v21, %v932_v52 }
 0x295   :  { %1096 = vst.msk [vmem:[%s1973_s2 + $0xe8] sm:$0xff] %vm1066_vm1, %v1031_v53  ;;  %v994_v20 = vpop.xlane.xlu0 %993 }
 0x296   :  { %v1062_v24 = vsel %vm1001_vm0, %v866_v22, %v994_v20 }
 0x297   :  { %1127 = vst.msk [vmem:[%s1973_s2 + $0x1e0] sm:$0xff] %vm1066_vm1, %v1062_v24  ;;  %v996_v54 = vpop.xlane.xlu1 %995 }
 0x298   :  { %v1063_v25 = vsel %vm1001_vm0, %v868_v19, %v996_v54 }
 0x299   :  { %1128 = vst.msk [vmem:[%s1973_s2 + $0x1e8] sm:$0xff] %vm1066_vm1, %v1063_v25  ;;  %v806_v26 = vpop.xlane.xlu0 %805 }
 0x29b   :  { %v808_v29 = vpop.xlane.xlu1 %807 }
 0x29d   :  { %v870_v30 = vpop.xlane.xlu0 %869 }
 0x29f   :  { %v872_v27 = vpop.xlane.xlu1 %871 }
 0x2a1   :  { %v934_v55 = vpop.xlane.xlu0 %933 }
 0x2a2   :  { %v1032_v56 = vsel %vm1001_vm0, %v806_v26, %v934_v55 }
 0x2a3   :  { %1097 = vst.msk [vmem:[%s1973_s2 + $0xf0] sm:$0xff] %vm1066_vm1, %v1032_v56  ;;  %v936_v31 = vpop.xlane.xlu1 %935 }
 0x2a4   :  { %v1033_v57 = vsel %vm1001_vm0, %v808_v29, %v936_v31 }
 0x2a5   :  { %1098 = vst.msk [vmem:[%s1973_s2 + $0xf8] sm:$0xff] %vm1066_vm1, %v1033_v57  ;;  %v998_v58 = vpop.xlane.xlu0 %997 }
 0x2a6   :  { %v1064_v28 = vsel %vm1001_vm0, %v870_v30, %v998_v58 }
 0x2a7   :  { %1129 = vst.msk [vmem:[%s1973_s2 + $0x1f0] sm:$0xff] %vm1066_vm1, %v1064_v28  ;;  %v1000_v59 = vpop.xlane.xlu1 %999 }
 0x2a8   :  { %v1065_v60 = vsel %vm1001_vm0, %v872_v27, %v1000_v59 }
 0x2a9   :  { %1130 = vst.msk [vmem:[%s1973_s2 + $0x1f8] sm:$0xff] %vm1066_vm1, %v1065_v60 }
 0x2aa   :  { %1135 = vsyncpa [#allocation3], 1 }
 0x2ab   :  { %1136 = vsyncpa [#allocation5], 1 }

</bundles_post_ra>
